<compile_context>
chip_gen: v5e
topology: v5e:2x2
jax: 0.10.0
libtpu: 0.0.40
codegen_flags: <defaults>
</compile_context>

<pallas_src>
import jax
import jax.numpy as jnp
from jax.experimental import pallas as pl
from jax.experimental.pallas import tpu as pltpu


def surrogate_mlp_kernel(x_ref, w1_ref, b1_ref, w2_ref, b2_ref, w3_ref, b3_ref,
                         o_ref):
    wdt = w1_ref.dtype
    # Layer 1: Linear(in_dim, Hp) + tanh  (accumulate in f32 on the MXU)
    h = jnp.dot(x_ref[...], w1_ref[...],
                preferred_element_type=jnp.float32) + b1_ref[...]
    h = jnp.tanh(h).astype(wdt)
    # Layer 2: Linear(Hp, Hp) + tanh
    h = jnp.dot(h, w2_ref[...],
                preferred_element_type=jnp.float32) + b2_ref[...]
    h = jnp.tanh(h).astype(wdt)
    # Output layer: Linear(Hp, out_dim), no activation
    o_ref[...] = (jnp.dot(h, w3_ref[...],
                          preferred_element_type=jnp.float32)
                  + b3_ref[...]).astype(o_ref.dtype)


def _round_up(x, m):
    return ((x + m - 1) // m) * m


def _cdiv(a, b):
    return -(-a // b)


def _pad_cols(a, n):
    if a.shape[1] == n:
        return a
    return jnp.zeros((a.shape[0], n), a.dtype).at[:, :a.shape[1]].set(a)


def _pad_rows(a, n):
    if a.shape[0] == n:
        return a
    return jnp.zeros((n, a.shape[1]), a.dtype).at[:a.shape[0], :].set(a)


def surrogate_network(x, params, *, block_b=2048, compute_dtype=None):
    """Fused forward pass of SurrogateNetwork on TPU via a single Pallas kernel.

    x: (B, in_dim) float32
    params: dict with w1 (in_dim, H), b1 (1, H), w2 (H, H), b2 (1, H),
            w3 (H, out_dim), b3 (1, out_dim)
    compute_dtype: optionally jnp.bfloat16 to halve x/weight HBM traffic on
            v6e/v7x (f32 accumulation kept; relax tolerance to ~1e-2).
    """
    w1, b1 = params["w1"], params["b1"]
    w2, b2 = params["w2"], params["b2"]
    w3, b3 = params["w3"], params["b3"]
    B, in_dim = x.shape
    H = w1.shape[1]
    out_dim = w3.shape[1]

    # Optional low-precision compute path (biases stay f32; they add to the
    # f32 accumulator inside the kernel).
    if compute_dtype is not None and compute_dtype != jnp.float32:
        x = x.astype(compute_dtype)
        w1 = w1.astype(compute_dtype)
        w2 = w2.astype(compute_dtype)
        w3 = w3.astype(compute_dtype)

    # --- Hidden-width padding to a lane-dense, MXU-aligned multiple of 128.
    # tanh(0)=0, so the padded hidden lanes stay exactly zero.
    h_pad = _round_up(max(H, 128), 128)
    w1p = _pad_cols(w1, h_pad)
    b1p = _pad_cols(b1, h_pad)
    w2p = _pad_cols(_pad_rows(w2, h_pad), h_pad)
    b2p = _pad_cols(b2, h_pad)
    w3p = _pad_rows(w3, h_pad)
    b3p = b3  # output width kept at out_dim (no lane padding, no out slice)

    # --- Batch tiling: tb rows per grid step (multiple of 8 for sublanes).
    tb = min(block_b, _round_up(B, 8))
    if B >= 16:
        # Ensure >= 2 grid steps so the parallel batch axis can shard across
        # both TensorCores on v7x (costs only one extra ~0.35us step on 1-TC
        # chips).
        tb = min(tb, max(8, _round_up(_cdiv(B, 2), 8)))

    # --- VMEM guard (v5e scoped default is small; v7x physical VMEM is 64MiB).
    weight_bytes = 4 * (in_dim * h_pad + h_pad * h_pad + h_pad * out_dim
                        + 2 * h_pad + out_dim)

    def _step_bytes(t):
        # double-buffered x/out tiles + hidden-activation working set (rough)
        return 4 * (2 * t * in_dim + 2 * t * out_dim + 2 * t * h_pad)

    while tb > 8 and weight_bytes + _step_bytes(tb) > (12 << 20):
        tb = max(8, _round_up(tb // 2, 8))

    vmem_need = weight_bytes + _step_bytes(tb)
    vmem_limit = None
    if vmem_need > (12 << 20):
        vmem_limit = int(min(_round_up(2 * vmem_need, 1 << 20), 60 << 20))

    grid = (_cdiv(B, tb),)

    def const_spec(shape):
        return pl.BlockSpec(shape, lambda i: (0, 0))  # resident across steps

    # Advisory cost estimate for the XLA scheduler.
    flops = 2 * B * (in_dim * h_pad + h_pad * h_pad + h_pad * out_dim)
    bytes_accessed = (x.dtype.itemsize * B * in_dim + 4 * B * out_dim
                      + w1p.dtype.itemsize * (in_dim * h_pad + h_pad * h_pad
                                              + h_pad * out_dim)
                      + 4 * (2 * h_pad + out_dim))
    cost = pl.CostEstimate(flops=flops,
                           transcendentals=2 * B * h_pad,
                           bytes_accessed=bytes_accessed)

    out = pl.pallas_call(
        surrogate_mlp_kernel,
        out_shape=jax.ShapeDtypeStruct((B, out_dim), jnp.float32),
        grid=grid,
        in_specs=[
            pl.BlockSpec((tb, in_dim), lambda i: (i, 0)),   # x: tiled on batch
            const_spec(w1p.shape), const_spec(b1p.shape),   # weights: resident
            const_spec(w2p.shape), const_spec(b2p.shape),
            const_spec(w3p.shape), const_spec(b3p.shape),
        ],
        out_specs=pl.BlockSpec((tb, out_dim), lambda i: (i, 0)),
        compiler_params=pltpu.CompilerParams(
            dimension_semantics=("parallel",),
            vmem_limit_bytes=vmem_limit),
        cost_estimate=cost,
    )(x, w1p, b1p, w2p, b2p, w3p, b3p)

    return out


def init_params(key, in_dim, out_dim, n_hidden):
    """Deterministic synthetic init (PyTorch-Linear-style uniform fan-in)."""
    ks = jax.random.split(key, 6)

    def linear(kw, kb, fan_in, fan_out):
        bound = 1.0 / jnp.sqrt(fan_in)
        w = jax.random.uniform(kw, (fan_in, fan_out), jnp.float32, -bound, bound)
        b = jax.random.uniform(kb, (1, fan_out), jnp.float32, -bound, bound)
        return w, b

    w1, b1 = linear(ks[0], ks[1], in_dim, n_hidden)
    w2, b2 = linear(ks[2], ks[3], n_hidden, n_hidden)
    w3, b3 = linear(ks[4], ks[5], n_hidden, out_dim)
    return {"w1": w1, "b1": b1, "w2": w2, "b2": b2, "w3": w3, "b3": b3}


def reference_forward(x, p):
    h = jnp.tanh(x @ p["w1"] + p["b1"])
    h = jnp.tanh(h @ p["w2"] + p["b2"])
    return h @ p["w3"] + p["b3"]


if __name__ == "__main__":
    key = jax.random.PRNGKey(0)
    k_x, k_p = jax.random.split(key)

    batch, in_dim, n_hidden, out_dim = 8, 16, 64, 4
    x = jax.random.normal(k_x, (batch, in_dim), jnp.float32)
    params = init_params(k_p, in_dim, out_dim, n_hidden)

    out = jax.block_until_ready(surrogate_network(x, params))
    ref = reference_forward(x, params)
    assert out.shape == (batch, out_dim)
    assert jnp.allclose(out, ref, atol=1e-5, rtol=1e-5), "mismatch vs reference"

    # Ragged batch (B not a multiple of the tile) + multi-step grid.
    x2 = jax.random.normal(jax.random.PRNGKey(1), (1000, in_dim), jnp.float32)
    out2 = jax.block_until_ready(surrogate_network(x2, params))
    ref2 = reference_forward(x2, params)
    assert out2.shape == (1000, out_dim)
    assert jnp.allclose(out2, ref2, atol=1e-5, rtol=1e-5), "mismatch (ragged)"

    # Optional bf16 compute path (halves x/weight HBM traffic on v6e/v7x).
    out3 = jax.block_until_ready(
        surrogate_network(x2, params, compute_dtype=jnp.bfloat16))
    assert out3.shape == (1000, out_dim)
    assert float(jnp.max(jnp.abs(out3 - ref2))) < 0.1, "bf16 path too far off"

    print("KERNEL_OK")
</pallas_src>

<mosaic_0001>
module attributes {stable_mosaic.version = 11 : i64} {
  func.func @surrogate_mlp_kernel(%arg0: i32, %arg1: memref<8x16xf32, #tpu.memory_space<vmem>>, %arg2: memref<16x128xf32, #tpu.memory_space<vmem>>, %arg3: memref<1x128xf32, #tpu.memory_space<vmem>>, %arg4: memref<128x128xf32, #tpu.memory_space<vmem>>, %arg5: memref<1x128xf32, #tpu.memory_space<vmem>>, %arg6: memref<128x4xf32, #tpu.memory_space<vmem>>, %arg7: memref<1x4xf32, #tpu.memory_space<vmem>>, %arg8: memref<8x4xf32, #tpu.memory_space<vmem>>) attributes {dimension_semantics = [#tpu.dimension_semantics<parallel>], iteration_bounds = array<i64: 1>, scalar_prefetch = 0 : i64, scratch_operands = 0 : i64, tpu.core_type = #tpu.core_type<tc>, window_params = [{transform_indices = @transform_0, window_bounds = array<i64: 8, 16>}, {pipeline_mode = #tpu.pipeline_mode<synchronous>, transform_indices = @transform_1, window_bounds = array<i64: 16, 128>}, {pipeline_mode = #tpu.pipeline_mode<synchronous>, transform_indices = @transform_2, window_bounds = array<i64: 1, 128>}, {pipeline_mode = #tpu.pipeline_mode<synchronous>, transform_indices = @transform_3, window_bounds = array<i64: 128, 128>}, {pipeline_mode = #tpu.pipeline_mode<synchronous>, transform_indices = @transform_4, window_bounds = array<i64: 1, 128>}, {pipeline_mode = #tpu.pipeline_mode<synchronous>, transform_indices = @transform_5, window_bounds = array<i64: 128, 4>}, {pipeline_mode = #tpu.pipeline_mode<synchronous>, transform_indices = @transform_6, window_bounds = array<i64: 1, 4>}, {transform_indices = @transform_7, window_bounds = array<i64: 8, 4>}]} {
    %c0 = arith.constant 0 : index
    %c0_0 = arith.constant 0 : index
    %0 = vector.load %arg1[%c0, %c0_0] : memref<8x16xf32, #tpu.memory_space<vmem>>, vector<8x16xf32>
    %c0_1 = arith.constant 0 : index
    %c0_2 = arith.constant 0 : index
    %1 = vector.load %arg2[%c0_1, %c0_2] : memref<16x128xf32, #tpu.memory_space<vmem>>, vector<16x128xf32>
    %cst = arith.constant dense<0.000000e+00> : vector<8x128xf32>
    %2 = tpu.matmul %0, %1, %cst {dimension_numbers = #tpu.dot_dimension_numbers<[1], [0], [0], [1], [0, 0, 1, 1], [], []>} : vector<8x16xf32>, vector<16x128xf32>, vector<8x128xf32> -> vector<8x128xf32>
    %c0_3 = arith.constant 0 : index
    %c0_4 = arith.constant 0 : index
    %3 = vector.load %arg3[%c0_3, %c0_4] : memref<1x128xf32, #tpu.memory_space<vmem>>, vector<1x128xf32>
    %4 = vector.broadcast %3 : vector<1x128xf32> to vector<8x128xf32>
    %5 = arith.addf %2, %4 : vector<8x128xf32>
    %6 = math.tanh %5 : vector<8x128xf32>
    %c0_5 = arith.constant 0 : index
    %c0_6 = arith.constant 0 : index
    %7 = vector.load %arg4[%c0_5, %c0_6] : memref<128x128xf32, #tpu.memory_space<vmem>>, vector<128x128xf32>
    %cst_7 = arith.constant dense<0.000000e+00> : vector<8x128xf32>
    %8 = tpu.matmul %6, %7, %cst_7 {dimension_numbers = #tpu.dot_dimension_numbers<[1], [0], [0], [1], [0, 0, 1, 1], [], []>} : vector<8x128xf32>, vector<128x128xf32>, vector<8x128xf32> -> vector<8x128xf32>
    %c0_8 = arith.constant 0 : index
    %c0_9 = arith.constant 0 : index
    %9 = vector.load %arg5[%c0_8, %c0_9] : memref<1x128xf32, #tpu.memory_space<vmem>>, vector<1x128xf32>
    %10 = vector.broadcast %9 : vector<1x128xf32> to vector<8x128xf32>
    %11 = arith.addf %8, %10 : vector<8x128xf32>
    %12 = math.tanh %11 : vector<8x128xf32>
    %c0_10 = arith.constant 0 : index
    %c0_11 = arith.constant 0 : index
    %13 = vector.load %arg6[%c0_10, %c0_11] : memref<128x4xf32, #tpu.memory_space<vmem>>, vector<128x4xf32>
    %cst_12 = arith.constant dense<0.000000e+00> : vector<8x4xf32>
    %14 = tpu.matmul %12, %13, %cst_12 {dimension_numbers = #tpu.dot_dimension_numbers<[1], [0], [0], [1], [0, 0, 1, 1], [], []>} : vector<8x128xf32>, vector<128x4xf32>, vector<8x4xf32> -> vector<8x4xf32>
    %c0_13 = arith.constant 0 : index
    %c0_14 = arith.constant 0 : index
    %15 = vector.load %arg7[%c0_13, %c0_14] : memref<1x4xf32, #tpu.memory_space<vmem>>, vector<1x4xf32>
    %16 = vector.broadcast %15 : vector<1x4xf32> to vector<8x4xf32>
    %17 = arith.addf %14, %16 : vector<8x4xf32>
    %c0_15 = arith.constant 0 : index
    %c0_16 = arith.constant 0 : index
    %18 = vector.load %arg8[%c0_15, %c0_16] : memref<8x4xf32, #tpu.memory_space<vmem>>, vector<8x4xf32>
    tpu.vector_store %arg8[%c0_15, %c0_16], %17 {strides = array<i32>} : memref<8x4xf32, #tpu.memory_space<vmem>>, vector<8x4xf32>,
    return
  }
  func.func @transform_0(%arg0: i32) -> (i32, i32) {
    %c0_i32 = arith.constant 0 : i32
    %c0_i32_0 = arith.constant 0 : i32
    return %arg0, %c0_i32 : i32, i32
  }
  func.func @transform_1(%arg0: i32) -> (i32, i32) {
    %c0_i32 = arith.constant 0 : i32
    %c0_i32_0 = arith.constant 0 : i32
    %c0_i32_1 = arith.constant 0 : i32
    return %c0_i32, %c0_i32_0 : i32, i32
  }
  func.func @transform_2(%arg0: i32) -> (i32, i32) {
    %c0_i32 = arith.constant 0 : i32
    %c0_i32_0 = arith.constant 0 : i32
    %c0_i32_1 = arith.constant 0 : i32
    return %c0_i32, %c0_i32_0 : i32, i32
  }
  func.func @transform_3(%arg0: i32) -> (i32, i32) {
    %c0_i32 = arith.constant 0 : i32
    %c0_i32_0 = arith.constant 0 : i32
    %c0_i32_1 = arith.constant 0 : i32
    return %c0_i32, %c0_i32_0 : i32, i32
  }
  func.func @transform_4(%arg0: i32) -> (i32, i32) {
    %c0_i32 = arith.constant 0 : i32
    %c0_i32_0 = arith.constant 0 : i32
    %c0_i32_1 = arith.constant 0 : i32
    return %c0_i32, %c0_i32_0 : i32, i32
  }
  func.func @transform_5(%arg0: i32) -> (i32, i32) {
    %c0_i32 = arith.constant 0 : i32
    %c0_i32_0 = arith.constant 0 : i32
    %c0_i32_1 = arith.constant 0 : i32
    return %c0_i32, %c0_i32_0 : i32, i32
  }
  func.func @transform_6(%arg0: i32) -> (i32, i32) {
    %c0_i32 = arith.constant 0 : i32
    %c0_i32_0 = arith.constant 0 : i32
    %c0_i32_1 = arith.constant 0 : i32
    return %c0_i32, %c0_i32_0 : i32, i32
  }
  func.func @transform_7(%arg0: i32) -> (i32, i32) {
    %c0_i32 = arith.constant 0 : i32
    %c0_i32_0 = arith.constant 0 : i32
    return %arg0, %c0_i32 : i32, i32
  }
}

</mosaic_0001>

<bundles_post_ra>
// kernel: tpu_custom_call.1
= control target key start
LH: loop header
LB: loop body
LE: loop exit
PB: predicated region body
PF: predicated region fallthrough
CT: control target
= control target key end

     0   :  { %12 = vsyncpa [#allocation3], 0  ;;  %s399_s0 = inlined_call_operand.hbm [shape: f32[8,16], index: 0, kind: input, shape index: {}]   ;;  %s400_s1 = inlined_call_operand.hbm [shape: f32[16,128], index: 1, kind: input, shape index: {}]   ;;  %s401_s2 = inlined_call_operand.vmem [shape: f32[1,128], index: 2, kind: input, shape index: {}]   ;;  %s402_s3 = inlined_call_operand.vmem [shape: f32[128,128], index: 3, kind: input, shape index: {}]   ;;  %s403_s4 = inlined_call_operand.vmem [shape: f32[1,128], index: 4, kind: input, shape index: {}]   ;;  %s404_s5 = inlined_call_operand.vmem [shape: f32[128,4], index: 5, kind: input, shape index: {}]   ;;  %s405_s6 = inlined_call_operand.vmem [shape: f32[1,4], index: 6, kind: input, shape index: {}]   ;;  %s406_s7 = inlined_call_operand.vmem [shape: f32[8,4], index: 7, kind: output, shape index: {}]  }
   0x1   :  { %s19_s26 = sshll.u32 %s399_s0, 4  ;;  %s20_s26 = int_to_ptr.hbm [resolvable:$true] %s19_s26 }
   0x2   :  { %13 = vsyncpa [#allocation5], 0  ;;  %s241_s27 = smov [#allocation2]   ;;  %s29_s8 = sshll.u32 %s400_s1, 4  ;;  %s30_s8 = int_to_ptr.hbm [resolvable:$true] %s29_s8 }
   0x3   :  { %s21_s28 = sshll.u32 %s241_s27, 4  ;;  %s242_s9 = smov [#allocation4]   ;;  %s22_s28 = int_to_ptr.vmem [resolvable:$true] %s21_s28 }
   0x4   :  { %24 = dma.hbm_to_vmem [thread:$0]  %s20_s26, 128, %s22_s28, [#allocation3]  }
   0x5   :  { %s31_s10 = sshll.u32 %s242_s9, 4  ;;  %s243_s11 = smov 128   ;;  %s32_s10 = int_to_ptr.vmem [resolvable:$true] %s31_s10 }
   0x6   :  { %s244_s12 = smov 8  }
   0x7   :  { %37 = dma.hbm_to_vmem [thread:$0]  %s30_s8, 256, %s32_s10, [#allocation5], %s243_s11, %s243_s11, %s244_s12  }
   0x8   :  { %237 = dma.done.wait [#allocation3], 128  }
   0x9   :  { %238 = vsyncadd [#allocation3], 4294967168 }
   0xa   :  { %239 = dma.done.wait [#allocation5], 256  }
   0xb   :  { %240 = vsyncadd [#allocation5], 4294967040  ;;  %v58_v0 = vld [vmem:[#allocation4 + $0x8] sm:$0xff]  ;;  %v57_v1 = vld [vmem:[#allocation4] sm:$0xff]  ;;  %vm63_vm0 = vcmask 130048   ;;  %vm169_vm1 = vcmask 31744  }
   0xc   :  { %81 = vmatpush.msra.mxu0 %v58_v0  ;;  %v56_v2 = vld [vmem:[#allocation2] sm:$0xff]  ;;  %v103_v3 = vld [vmem:[%s402_s3 + $0x78] sm:$0xff]  ;;  %v102_v4 = vld [vmem:[%s402_s3 + $0x70] sm:$0xff] }
   0xd   :  { %108 = vmatpush.msra.mxu1 %v103_v3  ;;  %v101_v5 = vld [vmem:[%s402_s3 + $0x68] sm:$0xff]  ;;  %v100_v6 = vld [vmem:[%s402_s3 + $0x60] sm:$0xff]  ;;  %v99_v7 = vld [vmem:[%s402_s3 + $0x58] sm:$0xff] }
   0xe   :  { %82 = vmatpush.msra.mxu0 %v57_v1  ;;  %v98_v8 = vld [vmem:[%s402_s3 + $0x50] sm:$0xff]  ;;  %v97_v9 = vld [vmem:[%s402_s3 + $0x48] sm:$0xff]  ;;  %v96_v10 = vld [vmem:[%s402_s3 + $0x40] sm:$0xff] }
   0xf   :  { %177 = vmatmul.msk.f32.vlgmr.msra.gmra.mxu0 %vm63_vm0, %v56_v2  ;;  %109 = vmatpush.msra.mxu1 %v102_v4  ;;  %v95_v11 = vld [vmem:[%s402_s3 + $0x38] sm:$0xff]  ;;  %v94_v12 = vld [vmem:[%s402_s3 + $0x30] sm:$0xff]  ;;  %v93_v13 = vld [vmem:[%s402_s3 + $0x28] sm:$0xff] }
  0x10   :  { %v92_v14 = vld [vmem:[%s402_s3 + $0x20] sm:$0xff]  ;;  %v91_v15 = vld [vmem:[%s402_s3 + $0x18] sm:$0xff]  ;;  %v90_v16 = vld [vmem:[%s402_s3 + $0x10] sm:$0xff] }
  0x11   :  { %110 = vmatpush.msra.mxu1 %v101_v5  ;;  %v89_v17 = vld [vmem:[%s402_s3 + $0x8] sm:$0xff]  ;;  %v88_v18 = vld [vmem:[%s402_s3] sm:$0xff]  ;;  %v144_v19 = vld [vmem:[%s404_s5 + $0x78] sm:$0xff] }
  0x12   :  { %v143_v20 = vld [vmem:[%s404_s5 + $0x70] sm:$0xff]  ;;  %149 = vmatpush.msra.mxu2 %v144_v19  ;;  %v142_v21 = vld [vmem:[%s404_s5 + $0x68] sm:$0xff]  ;;  %v141_v22 = vld [vmem:[%s404_s5 + $0x60] sm:$0xff] }
  0x13   :  { %111 = vmatpush.msra.mxu1 %v100_v6  ;;  %v140_v23 = vld [vmem:[%s404_s5 + $0x58] sm:$0xff]  ;;  %v139_v24 = vld [vmem:[%s404_s5 + $0x50] sm:$0xff]  ;;  %v138_v25 = vld [vmem:[%s404_s5 + $0x48] sm:$0xff] }
  0x14   :  { %150 = vmatpush.msra.mxu2 %v143_v20  ;;  %v137_v26 = vld [vmem:[%s404_s5 + $0x40] sm:$0xff]  ;;  %v136_v27 = vld [vmem:[%s404_s5 + $0x38] sm:$0xff]  ;;  %v135_v28 = vld [vmem:[%s404_s5 + $0x30] sm:$0xff] }
  0x15   :  { %112 = vmatpush.msra.mxu1 %v99_v7  ;;  %v134_v29 = vld [vmem:[%s404_s5 + $0x28] sm:$0xff]  ;;  %v182_v30 = vld [vmem:[%s401_s2] ss:$0 sm:$0xff]  ;;  %v132_v35 = vld [vmem:[%s404_s5 + $0x18] sm:$0xff] }
  0x16   :  { %151 = vmatpush.msra.mxu2 %v142_v21  ;;  %v133_v34 = vld [vmem:[%s404_s5 + $0x20] sm:$0xff]  ;;  %v131_v36 = vld [vmem:[%s404_s5 + $0x10] sm:$0xff]  ;;  %v130_v37 = vld [vmem:[%s404_s5 + $0x8] sm:$0xff] }
  0x17   :  { %113 = vmatpush.msra.mxu1 %v98_v8  ;;  %v129_v38 = vld [vmem:[%s404_s5] sm:$0xff] }
  0x18   :  { %152 = vmatpush.msra.mxu2 %v141_v22  ;;  %v183_v39 = vld [vmem:[%s403_s4] ss:$0 sm:$0xff] }
  0x19   :  { %114 = vmatpush.msra.mxu1 %v97_v9  ;;  %v184_v43 = vld [vmem:[%s405_s6] ss:$0 sm:$0xff] }
  0x1a   :  { %153 = vmatpush.msra.mxu2 %v140_v23 }
  0x1b   :  { %115 = vmatpush.msra.mxu1 %v96_v10 }
  0x1c   :  { %154 = vmatpush.msra.mxu2 %v139_v24 }
  0x1d   :  { %116 = vmatpush.msra.mxu1 %v95_v11 }
  0x1e   :  { %155 = vmatpush.msra.mxu2 %v138_v25 }
  0x1f   :  { %117 = vmatpush.msra.mxu1 %v94_v12 }
  0x20   :  { %156 = vmatpush.msra.mxu2 %v137_v26 }
  0x21   :  { %118 = vmatpush.msra.mxu1 %v93_v13 }
  0x22   :  { %157 = vmatpush.msra.mxu2 %v136_v27 }
  0x23   :  { %119 = vmatpush.msra.mxu1 %v92_v14 }
  0x24   :  { %158 = vmatpush.msra.mxu2 %v135_v28 }
  0x25   :  { %120 = vmatpush.msra.mxu1 %v91_v15 }
  0x26   :  { %159 = vmatpush.msra.mxu2 %v134_v29 }
  0x27   :  { %121 = vmatpush.msra.mxu1 %v90_v16 }
  0x28   :  { %160 = vmatpush.msra.mxu2 %v133_v34 }
  0x29   :  { %122 = vmatpush.msra.mxu1 %v89_v17 }
  0x2a   :  { %161 = vmatpush.msra.mxu2 %v132_v35 }
  0x2b   :  { %123 = vmatpush.msra.mxu1 %v88_v18 }
  0x2c   :  { %162 = vmatpush.msra.mxu2 %v131_v36 }
  0x2e   :  { %163 = vmatpush.msra.mxu2 %v130_v37 }
  0x30   :  { %164 = vmatpush.msra.mxu2 %v129_v38 }
  0x8c   :  { %v84_v31 = vpop.f32.mrf.mxu0 }
  0x8d   :  { %v85_v32 = vadd.f32 %v182_v30, %v84_v31 }
  0x8f   :  { %185 = vtanh.f32 %v85_v32 }
  0x95   :  { %v186_v33 = vpop.eup %185 }
  0x96   :  { %124 = vmatmul.f32.vlgmr.msra.gmra.mxu1 %v186_v33 }
 0x113   :  { %v125_v40 = vpop.f32.mrf.mxu1 }
 0x114   :  { %v126_v41 = vadd.f32 %v183_v39, %v125_v40 }
 0x116   :  { %187 = vtanh.f32 %v126_v41 }
 0x11c   :  { %v188_v42 = vpop.eup %187 }
 0x11d   :  { %165 = vmatmul.f32.vlgmr.msra.gmra.mxu2 %v188_v42 }
 0x1a0   :  { %v166_v44 = vpop.f32.mrf.mxu2 }
 0x1a1   :  { %v167_v45 = vadd.f32 %v184_v43, %v166_v44 }
 0x1a3   :  { %170 = vst.msk [vmem:[%s406_s7] sm:$0xff] %vm169_vm1, %v167_v45 }
 0x1a4   :  { %175 = vsyncpa [#allocation3], 1 }
 0x1a5   :  { %176 = vsyncpa [#allocation5], 1 }

</bundles_post_ra>
